<compile_context>
chip_gen: v7x
topology: tpu7x:2x2x1
jax: 0.10.0
libtpu: 0.0.40
codegen_flags: <defaults>
</compile_context>

<pallas_src>
import functools

import jax
import jax.numpy as jnp
from jax.experimental import pallas as pl
from jax.experimental.pallas import tpu as pltpu


def _lstm_rnn_kernel(ids_ref, embed_ref, w_cat_ref, b_ref, h0_ref, c0_ref,
                     w_fc_ref, b_fc_ref,
                     out_ref, h_out_ref, c_out_ref,
                     xh_scratch, *, num_layers, hidden_size, vocab_size):
    B = h0_ref.shape[1]
    H = hidden_size
    V = vocab_size

    # --- Embedding via one-hot matmul (single MXU push; replaces the serialized
    #     scalar gather loop). Exact in f32: each one-hot row selects one table row. ---
    ids = ids_ref[...]                                                # (B, 1) int32
    iota = jax.lax.broadcasted_iota(jnp.int32, (B, V), 1)             # (B, V)
    onehot = (ids == iota).astype(jnp.float32)                        # (B, V)
    emb = jnp.dot(onehot, embed_ref[...],
                  preferred_element_type=jnp.float32)                 # (B, H)

    # Persistent xh scratch: [:, :H] = layer input, [:, H:] = h_prev (rewritten per layer).
    xh_scratch[:, 0:H] = emb

    last_h = emb
    for layer in range(num_layers):                                   # statically unrolled
        # NOTE: h0_ref/c0_ref alias h_out_ref/c_out_ref (HBM). Reads at index `layer`
        # happen before the writes at the same index below - keep that ordering.
        xh_scratch[:, H:2 * H] = h0_ref[layer]
        xh = xh_scratch[...]                                          # (B, 2H)

        # Fused gate matmul: one K=2H MXU push per layer -> (B, 4H) = one full vreg.
        gates = (jnp.dot(xh, w_cat_ref[layer],
                         preferred_element_type=jnp.float32)
                 + b_ref[layer])                                      # (B, 4H)

        i_g = jax.nn.sigmoid(gates[:, 0 * H:1 * H])
        f_g = jax.nn.sigmoid(gates[:, 1 * H:2 * H])
        g_g = jnp.tanh(gates[:, 2 * H:3 * H])
        o_g = jax.nn.sigmoid(gates[:, 3 * H:4 * H])

        c_new = f_g * c0_ref[layer] + i_g * g_g
        h_new = o_g * jnp.tanh(c_new)

        h_out_ref[layer] = h_new
        c_out_ref[layer] = c_new
        xh_scratch[:, 0:H] = h_new                                    # input of next layer
        last_h = h_new

    # --- Final linear head on last layer's hidden state ---
    out_ref[...] = (jnp.dot(last_h, w_fc_ref[...],
                            preferred_element_type=jnp.float32)
                    + b_fc_ref[...])


def prepare_params(params):
    """One-time weight prep (transpose + gate fusion). No padding: gates stay packed."""
    L = params["w_ih"].shape[0]
    w_cat = jnp.concatenate(
        [jnp.transpose(params["w_ih"], (0, 2, 1)),     # (L, H, 4H)
         jnp.transpose(params["w_hh"], (0, 2, 1))],    # (L, H, 4H)
        axis=1)                                        # (L, 2H, 4H)
    H4 = w_cat.shape[-1]
    b = (params["b_ih"] + params["b_hh"]).reshape(L, 1, H4)
    return {
        "embed": params["embed"],                      # (V, H)
        "w_cat": w_cat,
        "b": b,
        "w_fc": params["w_fc"].T,                      # (H, O)
        "b_fc": params["b_fc"].reshape(1, -1),         # (1, O)
    }


@functools.partial(jax.jit, donate_argnums=(2, 3))
def rnn_forward(x, prep, h0, c0):
    """Forward pass. `prep` = prepare_params(params). Returns (logits, (h_n, c_n)).
    h0/c0 are donated: together with input_output_aliases the state update is in-place."""
    B = x.shape[0]
    L, _, H = h0.shape
    V = prep["embed"].shape[0]
    O = prep["w_fc"].shape[1]

    ids = x.astype(jnp.int32).reshape(B, 1)
    vmem = pl.BlockSpec(memory_space=pltpu.MemorySpace.VMEM)
    kernel = functools.partial(_lstm_rnn_kernel, num_layers=L,
                               hidden_size=H, vocab_size=V)

    out, h_out, c_out = pl.pallas_call(
        kernel,
        out_shape=(
            jax.ShapeDtypeStruct((B, O), jnp.float32),
            jax.ShapeDtypeStruct((L, B, H), jnp.float32),
            jax.ShapeDtypeStruct((L, B, H), jnp.float32),
        ),
        in_specs=[vmem] * 8,
        out_specs=(vmem, vmem, vmem),
        scratch_shapes=[pltpu.VMEM((B, 2 * H), jnp.float32)],
        # h0 -> h_out, c0 -> c_out share HBM buffers (no fresh state buffers per call).
        input_output_aliases={4: 1, 5: 2},
        compiler_params=pltpu.CompilerParams(vmem_limit_bytes=32 * 1024 * 1024),
    )(ids, prep["embed"], prep["w_cat"], prep["b"], h0, c0,
      prep["w_fc"], prep["b_fc"])

    return out, (h_out, c_out)


def rnn_forward_ref(x, params, h0, c0):
    """Pure-JAX reference for correctness checking."""
    L, _, H = h0.shape
    inp = params["embed"][x.astype(jnp.int32)]                   # (B, H)
    hs, cs = [], []
    for layer in range(L):
        gates = (inp @ params["w_ih"][layer].T
                 + h0[layer] @ params["w_hh"][layer].T
                 + params["b_ih"][layer] + params["b_hh"][layer])
        i_g = jax.nn.sigmoid(gates[:, 0 * H:1 * H])
        f_g = jax.nn.sigmoid(gates[:, 1 * H:2 * H])
        g_g = jnp.tanh(gates[:, 2 * H:3 * H])
        o_g = jax.nn.sigmoid(gates[:, 3 * H:4 * H])
        c_new = f_g * c0[layer] + i_g * g_g
        h_new = o_g * jnp.tanh(c_new)
        hs.append(h_new)
        cs.append(c_new)
        inp = h_new
    out = inp @ params["w_fc"].T + params["b_fc"]
    return out, (jnp.stack(hs), jnp.stack(cs))


def init_params(key, input_size, hidden_size, num_layers, output_size):
    """Deterministic synthetic parameter init (shapes match nn.Embedding/nn.LSTM/nn.Linear)."""
    ks = jax.random.split(key, 7)
    H, V, L, O = hidden_size, input_size, num_layers, output_size
    s = 1.0 / jnp.sqrt(H)
    return {
        "embed": jax.random.normal(ks[0], (V, H), jnp.float32),
        "w_ih": jax.random.uniform(ks[1], (L, 4 * H, H), jnp.float32, -s, s),
        "w_hh": jax.random.uniform(ks[2], (L, 4 * H, H), jnp.float32, -s, s),
        "b_ih": jax.random.uniform(ks[3], (L, 4 * H), jnp.float32, -s, s),
        "b_hh": jax.random.uniform(ks[4], (L, 4 * H), jnp.float32, -s, s),
        "w_fc": jax.random.uniform(ks[5], (O, H), jnp.float32, -s, s),
        "b_fc": jax.random.uniform(ks[6], (O,), jnp.float32, -s, s),
    }
    # NOTE: self.dropout is defined in the module but never used in forward() -> omitted.


if __name__ == "__main__":
    INPUT_SIZE = 16   # vocab
    HIDDEN = 32
    NUM_LAYERS = 2
    OUTPUT = 10
    BATCH = 8

    key = jax.random.PRNGKey(0)
    pkey, xkey = jax.random.split(key)
    params = init_params(pkey, INPUT_SIZE, HIDDEN, NUM_LAYERS, OUTPUT)
    prep = prepare_params(params)   # hoisted: transposes / gate fusion done once

    x = jax.random.randint(xkey, (BATCH,), 0, INPUT_SIZE, dtype=jnp.int32)
    h0 = jnp.zeros((NUM_LAYERS, BATCH, HIDDEN), jnp.float32)  # init_hidden()
    c0 = jnp.zeros((NUM_LAYERS, BATCH, HIDDEN), jnp.float32)

    # Reference first (h0/c0 are donated to the kernel call and must not be reused after).
    ref_out, (ref_h, ref_c) = rnn_forward_ref(x, params, h0, c0)

    out, (h_n, c_n) = rnn_forward(x, prep, h0, c0)
    jax.block_until_ready((out, h_n, c_n))

    assert out.shape == (BATCH, OUTPUT)
    assert h_n.shape == (NUM_LAYERS, BATCH, HIDDEN)
    assert c_n.shape == (NUM_LAYERS, BATCH, HIDDEN)
    assert jnp.allclose(out, ref_out, atol=1e-5)
    assert jnp.allclose(h_n, ref_h, atol=1e-5)
    assert jnp.allclose(c_n, ref_c, atol=1e-5)

    print("KERNEL_OK")
</pallas_src>

<mosaic_0001>
module attributes {stable_mosaic.version = 11 : i64} {
  func.func @_lstm_rnn_kernel(%arg0: memref<8x1xi32, #tpu.memory_space<vmem>>, %arg1: memref<16x32xf32, #tpu.memory_space<vmem>>, %arg2: memref<2x64x128xf32, #tpu.memory_space<vmem>>, %arg3: memref<2x1x128xf32, #tpu.memory_space<vmem>>, %arg4: memref<2x8x32xf32, #tpu.memory_space<vmem>>, %arg5: memref<2x8x32xf32, #tpu.memory_space<vmem>>, %arg6: memref<32x10xf32, #tpu.memory_space<vmem>>, %arg7: memref<1x10xf32, #tpu.memory_space<vmem>>, %arg8: memref<8x10xf32, #tpu.memory_space<vmem>>, %arg9: memref<2x8x32xf32, #tpu.memory_space<vmem>>, %arg10: memref<2x8x32xf32, #tpu.memory_space<vmem>>, %arg11: memref<8x64xf32, #tpu.memory_space<vmem>>) attributes {dimension_semantics = [], scalar_prefetch = 0 : i64, scratch_operands = 1 : i64, tpu.core_type = #tpu.core_type<tc>} {
    %c0 = arith.constant 0 : index
    %c0_0 = arith.constant 0 : index
    %0 = vector.load %arg0[%c0, %c0_0] : memref<8x1xi32, #tpu.memory_space<vmem>>, vector<8x1xi32>
    %1 = tpu.iota {dimensions = array<i32: 1>} : vector<8x16xi32>
    %2 = vector.broadcast %0 : vector<8x1xi32> to vector<8x16xi32>
    %3 = arith.cmpi eq, %2, %1 : vector<8x16xi32>
    %4 = arith.extui %3 : vector<8x16xi1> to vector<8x16xi32>
    %5 = arith.sitofp %4 : vector<8x16xi32> to vector<8x16xf32>
    %c0_1 = arith.constant 0 : index
    %c0_2 = arith.constant 0 : index
    %6 = vector.load %arg1[%c0_1, %c0_2] : memref<16x32xf32, #tpu.memory_space<vmem>>, vector<16x32xf32>
    %cst = arith.constant dense<0.000000e+00> : vector<8x32xf32>
    %7 = tpu.matmul %5, %6, %cst {dimension_numbers = #tpu.dot_dimension_numbers<[1], [0], [0], [1], [0, 0, 1, 1], [], []>} : vector<8x16xf32>, vector<16x32xf32>, vector<8x32xf32> -> vector<8x32xf32>
    %c0_3 = arith.constant 0 : index
    %c0_4 = arith.constant 0 : index
    %8 = vector.load %arg11[%c0_3, %c0_4] : memref<8x64xf32, #tpu.memory_space<vmem>>, vector<8x32xf32>
    tpu.vector_store %arg11[%c0_3, %c0_4], %7 {strides = array<i32>} : memref<8x64xf32, #tpu.memory_space<vmem>>, vector<8x32xf32>,
    %c0_5 = arith.constant 0 : index
    %c0_6 = arith.constant 0 : index
    %c0_7 = arith.constant 0 : index
    %9 = vector.load %arg4[%c0_5, %c0_6, %c0_7] : memref<2x8x32xf32, #tpu.memory_space<vmem>>, vector<1x8x32xf32>
    %10 = vector.shape_cast %9 : vector<1x8x32xf32> to vector<8x32xf32>
    %c0_8 = arith.constant 0 : index
    %c32 = arith.constant 32 : index
    %11 = vector.load %arg11[%c0_8, %c32] : memref<8x64xf32, #tpu.memory_space<vmem>>, vector<8x32xf32>
    tpu.vector_store %arg11[%c0_8, %c32], %10 {strides = array<i32>} : memref<8x64xf32, #tpu.memory_space<vmem>>, vector<8x32xf32>,
    %c0_9 = arith.constant 0 : index
    %c0_10 = arith.constant 0 : index
    %12 = vector.load %arg11[%c0_9, %c0_10] : memref<8x64xf32, #tpu.memory_space<vmem>>, vector<8x64xf32>
    %c0_11 = arith.constant 0 : index
    %c0_12 = arith.constant 0 : index
    %c0_13 = arith.constant 0 : index
    %13 = vector.load %arg2[%c0_11, %c0_12, %c0_13] : memref<2x64x128xf32, #tpu.memory_space<vmem>>, vector<1x64x128xf32>
    %14 = vector.shape_cast %13 : vector<1x64x128xf32> to vector<64x128xf32>
    %cst_14 = arith.constant dense<0.000000e+00> : vector<8x128xf32>
    %15 = tpu.matmul %12, %14, %cst_14 {dimension_numbers = #tpu.dot_dimension_numbers<[1], [0], [0], [1], [0, 0, 1, 1], [], []>} : vector<8x64xf32>, vector<64x128xf32>, vector<8x128xf32> -> vector<8x128xf32>
    %c0_15 = arith.constant 0 : index
    %c0_16 = arith.constant 0 : index
    %c0_17 = arith.constant 0 : index
    %16 = vector.load %arg3[%c0_15, %c0_16, %c0_17] : memref<2x1x128xf32, #tpu.memory_space<vmem>>, vector<1x1x128xf32>
    %17 = vector.shape_cast %16 : vector<1x1x128xf32> to vector<1x128xf32>
    %18 = vector.broadcast %17 : vector<1x128xf32> to vector<8x128xf32>
    %19 = arith.addf %15, %18 : vector<8x128xf32>
    %20 = vector.extract_strided_slice %19 {offsets = [0, 0], sizes = [8, 32], strides = [1, 1]} : vector<8x128xf32> to vector<8x32xf32>
    %21 = arith.negf %20 : vector<8x32xf32>
    %22 = math.exp %21 : vector<8x32xf32>
    %cst_18 = arith.constant 1.000000e+00 : f32
    %23 = vector.broadcast %cst_18 : f32 to vector<8x32xf32>
    %24 = arith.addf %23, %22 : vector<8x32xf32>
    %25 = arith.divf %23, %24 : vector<8x32xf32>
    %26 = vector.extract_strided_slice %19 {offsets = [0, 32], sizes = [8, 32], strides = [1, 1]} : vector<8x128xf32> to vector<8x32xf32>
    %27 = arith.negf %26 : vector<8x32xf32>
    %28 = math.exp %27 : vector<8x32xf32>
    %cst_19 = arith.constant 1.000000e+00 : f32
    %29 = vector.broadcast %cst_19 : f32 to vector<8x32xf32>
    %30 = arith.addf %29, %28 : vector<8x32xf32>
    %31 = arith.divf %29, %30 : vector<8x32xf32>
    %32 = vector.extract_strided_slice %19 {offsets = [0, 64], sizes = [8, 32], strides = [1, 1]} : vector<8x128xf32> to vector<8x32xf32>
    %33 = math.tanh %32 : vector<8x32xf32>
    %34 = vector.extract_strided_slice %19 {offsets = [0, 96], sizes = [8, 32], strides = [1, 1]} : vector<8x128xf32> to vector<8x32xf32>
    %35 = arith.negf %34 : vector<8x32xf32>
    %36 = math.exp %35 : vector<8x32xf32>
    %cst_20 = arith.constant 1.000000e+00 : f32
    %37 = vector.broadcast %cst_20 : f32 to vector<8x32xf32>
    %38 = arith.addf %37, %36 : vector<8x32xf32>
    %39 = arith.divf %37, %38 : vector<8x32xf32>
    %c0_21 = arith.constant 0 : index
    %c0_22 = arith.constant 0 : index
    %c0_23 = arith.constant 0 : index
    %40 = vector.load %arg5[%c0_21, %c0_22, %c0_23] : memref<2x8x32xf32, #tpu.memory_space<vmem>>, vector<1x8x32xf32>
    %41 = vector.shape_cast %40 : vector<1x8x32xf32> to vector<8x32xf32>
    %42 = arith.mulf %31, %41 : vector<8x32xf32>
    %43 = arith.mulf %25, %33 : vector<8x32xf32>
    %44 = arith.addf %42, %43 : vector<8x32xf32>
    %45 = math.tanh %44 : vector<8x32xf32>
    %46 = arith.mulf %39, %45 : vector<8x32xf32>
    %c0_24 = arith.constant 0 : index
    %c0_25 = arith.constant 0 : index
    %c0_26 = arith.constant 0 : index
    %47 = vector.load %arg9[%c0_24, %c0_25, %c0_26] : memref<2x8x32xf32, #tpu.memory_space<vmem>>, vector<1x8x32xf32>
    %48 = vector.shape_cast %47 : vector<1x8x32xf32> to vector<8x32xf32>
    %49 = vector.shape_cast %46 : vector<8x32xf32> to vector<1x8x32xf32>
    tpu.vector_store %arg9[%c0_24, %c0_25, %c0_26], %49 {strides = array<i32>} : memref<2x8x32xf32, #tpu.memory_space<vmem>>, vector<1x8x32xf32>,
    %c0_27 = arith.constant 0 : index
    %c0_28 = arith.constant 0 : index
    %c0_29 = arith.constant 0 : index
    %50 = vector.load %arg10[%c0_27, %c0_28, %c0_29] : memref<2x8x32xf32, #tpu.memory_space<vmem>>, vector<1x8x32xf32>
    %51 = vector.shape_cast %50 : vector<1x8x32xf32> to vector<8x32xf32>
    %52 = vector.shape_cast %44 : vector<8x32xf32> to vector<1x8x32xf32>
    tpu.vector_store %arg10[%c0_27, %c0_28, %c0_29], %52 {strides = array<i32>} : memref<2x8x32xf32, #tpu.memory_space<vmem>>, vector<1x8x32xf32>,
    %c0_30 = arith.constant 0 : index
    %c0_31 = arith.constant 0 : index
    %53 = vector.load %arg11[%c0_30, %c0_31] : memref<8x64xf32, #tpu.memory_space<vmem>>, vector<8x32xf32>
    tpu.vector_store %arg11[%c0_30, %c0_31], %46 {strides = array<i32>} : memref<8x64xf32, #tpu.memory_space<vmem>>, vector<8x32xf32>,
    %c1 = arith.constant 1 : index
    %c0_32 = arith.constant 0 : index
    %c0_33 = arith.constant 0 : index
    %54 = vector.load %arg4[%c1, %c0_32, %c0_33] : memref<2x8x32xf32, #tpu.memory_space<vmem>>, vector<1x8x32xf32>
    %55 = vector.shape_cast %54 : vector<1x8x32xf32> to vector<8x32xf32>
    %c0_34 = arith.constant 0 : index
    %c32_35 = arith.constant 32 : index
    %56 = vector.load %arg11[%c0_34, %c32_35] : memref<8x64xf32, #tpu.memory_space<vmem>>, vector<8x32xf32>
    tpu.vector_store %arg11[%c0_34, %c32_35], %55 {strides = array<i32>} : memref<8x64xf32, #tpu.memory_space<vmem>>, vector<8x32xf32>,
    %c0_36 = arith.constant 0 : index
    %c0_37 = arith.constant 0 : index
    %57 = vector.load %arg11[%c0_36, %c0_37] : memref<8x64xf32, #tpu.memory_space<vmem>>, vector<8x64xf32>
    %c1_38 = arith.constant 1 : index
    %c0_39 = arith.constant 0 : index
    %c0_40 = arith.constant 0 : index
    %58 = vector.load %arg2[%c1_38, %c0_39, %c0_40] : memref<2x64x128xf32, #tpu.memory_space<vmem>>, vector<1x64x128xf32>
    %59 = vector.shape_cast %58 : vector<1x64x128xf32> to vector<64x128xf32>
    %cst_41 = arith.constant dense<0.000000e+00> : vector<8x128xf32>
    %60 = tpu.matmul %57, %59, %cst_41 {dimension_numbers = #tpu.dot_dimension_numbers<[1], [0], [0], [1], [0, 0, 1, 1], [], []>} : vector<8x64xf32>, vector<64x128xf32>, vector<8x128xf32> -> vector<8x128xf32>
    %c1_42 = arith.constant 1 : index
    %c0_43 = arith.constant 0 : index
    %c0_44 = arith.constant 0 : index
    %61 = vector.load %arg3[%c1_42, %c0_43, %c0_44] : memref<2x1x128xf32, #tpu.memory_space<vmem>>, vector<1x1x128xf32>
    %62 = vector.shape_cast %61 : vector<1x1x128xf32> to vector<1x128xf32>
    %63 = vector.broadcast %62 : vector<1x128xf32> to vector<8x128xf32>
    %64 = arith.addf %60, %63 : vector<8x128xf32>
    %65 = vector.extract_strided_slice %64 {offsets = [0, 0], sizes = [8, 32], strides = [1, 1]} : vector<8x128xf32> to vector<8x32xf32>
    %66 = arith.negf %65 : vector<8x32xf32>
    %67 = math.exp %66 : vector<8x32xf32>
    %cst_45 = arith.constant 1.000000e+00 : f32
    %68 = vector.broadcast %cst_45 : f32 to vector<8x32xf32>
    %69 = arith.addf %68, %67 : vector<8x32xf32>
    %70 = arith.divf %68, %69 : vector<8x32xf32>
    %71 = vector.extract_strided_slice %64 {offsets = [0, 32], sizes = [8, 32], strides = [1, 1]} : vector<8x128xf32> to vector<8x32xf32>
    %72 = arith.negf %71 : vector<8x32xf32>
    %73 = math.exp %72 : vector<8x32xf32>
    %cst_46 = arith.constant 1.000000e+00 : f32
    %74 = vector.broadcast %cst_46 : f32 to vector<8x32xf32>
    %75 = arith.addf %74, %73 : vector<8x32xf32>
    %76 = arith.divf %74, %75 : vector<8x32xf32>
    %77 = vector.extract_strided_slice %64 {offsets = [0, 64], sizes = [8, 32], strides = [1, 1]} : vector<8x128xf32> to vector<8x32xf32>
    %78 = math.tanh %77 : vector<8x32xf32>
    %79 = vector.extract_strided_slice %64 {offsets = [0, 96], sizes = [8, 32], strides = [1, 1]} : vector<8x128xf32> to vector<8x32xf32>
    %80 = arith.negf %79 : vector<8x32xf32>
    %81 = math.exp %80 : vector<8x32xf32>
    %cst_47 = arith.constant 1.000000e+00 : f32
    %82 = vector.broadcast %cst_47 : f32 to vector<8x32xf32>
    %83 = arith.addf %82, %81 : vector<8x32xf32>
    %84 = arith.divf %82, %83 : vector<8x32xf32>
    %c1_48 = arith.constant 1 : index
    %c0_49 = arith.constant 0 : index
    %c0_50 = arith.constant 0 : index
    %85 = vector.load %arg5[%c1_48, %c0_49, %c0_50] : memref<2x8x32xf32, #tpu.memory_space<vmem>>, vector<1x8x32xf32>
    %86 = vector.shape_cast %85 : vector<1x8x32xf32> to vector<8x32xf32>
    %87 = arith.mulf %76, %86 : vector<8x32xf32>
    %88 = arith.mulf %70, %78 : vector<8x32xf32>
    %89 = arith.addf %87, %88 : vector<8x32xf32>
    %90 = math.tanh %89 : vector<8x32xf32>
    %91 = arith.mulf %84, %90 : vector<8x32xf32>
    %c1_51 = arith.constant 1 : index
    %c0_52 = arith.constant 0 : index
    %c0_53 = arith.constant 0 : index
    %92 = vector.load %arg9[%c1_51, %c0_52, %c0_53] : memref<2x8x32xf32, #tpu.memory_space<vmem>>, vector<1x8x32xf32>
    %93 = vector.shape_cast %92 : vector<1x8x32xf32> to vector<8x32xf32>
    %94 = vector.shape_cast %91 : vector<8x32xf32> to vector<1x8x32xf32>
    tpu.vector_store %arg9[%c1_51, %c0_52, %c0_53], %94 {strides = array<i32>} : memref<2x8x32xf32, #tpu.memory_space<vmem>>, vector<1x8x32xf32>,
    %c1_54 = arith.constant 1 : index
    %c0_55 = arith.constant 0 : index
    %c0_56 = arith.constant 0 : index
    %95 = vector.load %arg10[%c1_54, %c0_55, %c0_56] : memref<2x8x32xf32, #tpu.memory_space<vmem>>, vector<1x8x32xf32>
    %96 = vector.shape_cast %95 : vector<1x8x32xf32> to vector<8x32xf32>
    %97 = vector.shape_cast %89 : vector<8x32xf32> to vector<1x8x32xf32>
    tpu.vector_store %arg10[%c1_54, %c0_55, %c0_56], %97 {strides = array<i32>} : memref<2x8x32xf32, #tpu.memory_space<vmem>>, vector<1x8x32xf32>,
    %c0_57 = arith.constant 0 : index
    %c0_58 = arith.constant 0 : index
    %98 = vector.load %arg11[%c0_57, %c0_58] : memref<8x64xf32, #tpu.memory_space<vmem>>, vector<8x32xf32>
    tpu.vector_store %arg11[%c0_57, %c0_58], %91 {strides = array<i32>} : memref<8x64xf32, #tpu.memory_space<vmem>>, vector<8x32xf32>,
    %c0_59 = arith.constant 0 : index
    %c0_60 = arith.constant 0 : index
    %99 = vector.load %arg6[%c0_59, %c0_60] : memref<32x10xf32, #tpu.memory_space<vmem>>, vector<32x10xf32>
    %cst_61 = arith.constant dense<0.000000e+00> : vector<8x10xf32>
    %100 = tpu.matmul %91, %99, %cst_61 {dimension_numbers = #tpu.dot_dimension_numbers<[1], [0], [0], [1], [0, 0, 1, 1], [], []>} : vector<8x32xf32>, vector<32x10xf32>, vector<8x10xf32> -> vector<8x10xf32>
    %c0_62 = arith.constant 0 : index
    %c0_63 = arith.constant 0 : index
    %101 = vector.load %arg7[%c0_62, %c0_63] : memref<1x10xf32, #tpu.memory_space<vmem>>, vector<1x10xf32>
    %102 = vector.broadcast %101 : vector<1x10xf32> to vector<8x10xf32>
    %103 = arith.addf %100, %102 : vector<8x10xf32>
    %c0_64 = arith.constant 0 : index
    %c0_65 = arith.constant 0 : index
    %104 = vector.load %arg8[%c0_64, %c0_65] : memref<8x10xf32, #tpu.memory_space<vmem>>, vector<8x10xf32>
    tpu.vector_store %arg8[%c0_64, %c0_65], %103 {strides = array<i32>} : memref<8x10xf32, #tpu.memory_space<vmem>>, vector<8x10xf32>,
    return
  }
}

</mosaic_0001>

<bundles_post_ra>
// kernel: rnn_forward.1
= control target key start
LH: loop header
LB: loop body
LE: loop exit
PB: predicated region body
PF: predicated region fallthrough
CT: control target
= control target key end

     0   :  { %16 = vsyncpa [#allocation4], 0  ;;  %s1107_s0 = inlined_call_operand.vmem [shape: s32[8,1], index: 0, kind: input, shape index: {}]   ;;  %s1108_s1 = inlined_call_operand.vmem [shape: f32[16,32], index: 1, kind: input, shape index: {}]   ;;  %s1109_s2 = inlined_call_operand.hbm [shape: f32[2,64,128], index: 2, kind: input, shape index: {}]   ;;  %s1110_s3 = inlined_call_operand.vmem [shape: f32[2,1,128], index: 3, kind: input, shape index: {}]   ;;  %s1111_s4 = inlined_call_operand.hbm [shape: f32[2,8,32], index: 4, kind: input, shape index: {}, may-alias: {4,9}]   ;;  %s1112_s5 = inlined_call_operand.hbm [shape: f32[2,8,32], index: 5, kind: input, shape index: {}, may-alias: {5,10}]   ;;  %s1113_s6 = inlined_call_operand.vmem [shape: f32[32,10], index: 6, kind: input, shape index: {}]   ;;  %s1114_s7 = inlined_call_operand.vmem [shape: f32[1,10], index: 7, kind: input, shape index: {}]   ;;  %s1115_s8 = inlined_call_operand.hbm [shape: f32[8,10], index: 8, kind: output, shape index: {0}]   ;;  %s1116_s9 = inlined_call_operand.hbm [shape: f32[2,8,32], index: 9, kind: output, shape index: {1}, may-alias: {4,9}]   ;;  %s1117_s10 = inlined_call_operand.hbm [shape: f32[2,8,32], index: 10, kind: output, shape index: {2}, may-alias: {5,10}]  }
   0x1   :  { %17 = vsyncpa [#allocation7], 0 }
   0x2   :  { %18 = vsyncpa [#allocation5], 0 }
   0x3   :  { %19 = vsyncpa [#allocation11], 0  ;;  %s870_s13 = smov [#allocation6]   ;;  %s871_s15 = smov [#allocation3]  }
   0x4   :  { %s43_s14 = sshll.u32 %s870_s13, 4  ;;  %s29_s16 = sshll.u32 %s871_s15, 4  ;;  %s44_s14 = int_to_ptr.vmem [resolvable:$true] %s43_s14  ;;  %s940_s16 = int_to_ptr.vmem [resolvable:$true] %s29_s16 }
   0x5   :  { %s730_s19 = scalar_lea.hbm %s1111_s4, 256 }
   0x6   :  { %p731_p0 = scmp.ne.s32.totalorder %s1111_s4, %s730_s19  ;;  %p734_p1 = scmp.lt.u32.totalorder %s730_s19, %s1111_s4 }
   0x8   :  { %p736_p2 = pnand %p734_p1, %p731_p0 }
   0xa   :  { %739 = shalt.err (!%p736_p2)
}
   0xb   :  { %s740_s24 = scalar_lea.vmem %s44_s14, 256  ;;  %p745_p4 = scmp.lt.s32.totalorder %s44_s14, %s44_s14 }
   0xc   :  { %p741_p3 = scmp.ne.s32.totalorder %s44_s14, %s740_s24  ;;  %p746_p5 = scmp.lt.s32.totalorder %s740_s24, %s740_s24 }
   0xe   :  { %p747_p6 = por %p746_p5, %p745_p4 }
  0x10   :  { %p748_p7 = pnand %p747_p6, %p741_p3 }
  0x12   :  { %751 = shalt.err (!%p748_p7)
}
  0x13   :  { %s872_s25 = smov 128   ;;  %s873_s26 = smov 8  }
  0x14   :  { %49 = dma.hbm_to_vmem [thread:$0]  %s1111_s4, 256, %s44_s14, [#allocation7], %s872_s25, %s872_s25, %s873_s26  }
  0x15   :  { %s752_s11 = scalar_lea.hbm %s1109_s2, 2048 }
  0x16   :  { %p753_p8 = scmp.ne.s32.totalorder %s1109_s2, %s752_s11  ;;  %p756_p9 = scmp.lt.u32.totalorder %s752_s11, %s1109_s2 }
  0x18   :  { %p758_p10 = pnand %p756_p9, %p753_p8 }
  0x1a   :  { %761 = shalt.err (!%p758_p10)
}
  0x1b   :  { %s762_s18 = scalar_lea.vmem %s940_s16, 2048  ;;  %p767_p12 = scmp.lt.s32.totalorder %s940_s16, %s940_s16 }
  0x1c   :  { %p763_p11 = scmp.ne.s32.totalorder %s940_s16, %s762_s18  ;;  %p768_p13 = scmp.lt.s32.totalorder %s762_s18, %s762_s18 }
  0x1e   :  { %p769_p0 = por %p768_p13, %p767_p12 }
  0x20   :  { %p770_p1 = pnand %p769_p0, %p763_p11 }
  0x22   :  { %773 = shalt.err (!%p770_p1)
}
  0x23   :  { %35 = dma.hbm_to_vmem [thread:$0]  %s1109_s2, 2048, %s940_s16, [#allocation4], %s872_s25, %s872_s25, %s873_s26  }
  0x24   :  { %s874_s19 = smov [#allocation8]   ;;  %s774_s23 = scalar_lea.hbm %s1112_s5, 256 }
  0x25   :  { %s55_s20 = sshll.u32 %s874_s19, 4  ;;  %p775_p2 = scmp.ne.s32.totalorder %s1112_s5, %s774_s23  ;;  %s56_s20 = int_to_ptr.vmem [resolvable:$true] %s55_s20 }
  0x26   :  { %p778_p3 = scmp.lt.u32.totalorder %s774_s23, %s1112_s5 }
  0x28   :  { %p780_p4 = pnand %p778_p3, %p775_p2 }
  0x2a   :  { %783 = shalt.err (!%p780_p4)
}
  0x2b   :  { %s784_s30 = scalar_lea.vmem %s56_s20, 256  ;;  %p789_p6 = scmp.lt.s32.totalorder %s56_s20, %s56_s20 }
  0x2c   :  { %p785_p5 = scmp.ne.s32.totalorder %s56_s20, %s784_s30  ;;  %p790_p7 = scmp.lt.s32.totalorder %s784_s30, %s784_s30 }
  0x2e   :  { %p791_p8 = por %p790_p7, %p789_p6 }
  0x30   :  { %p792_p9 = pnand %p791_p8, %p785_p5 }
  0x32   :  { %795 = shalt.err (!%p792_p9)
}
  0x33   :  { %61 = dma.hbm_to_vmem [thread:$0]  %s1112_s5, 256, %s56_s20, [#allocation7], %s872_s25, %s872_s25, %s873_s26  }
  0x34   :  { %862 = dma.done.wait [#allocation4], 2048  }
  0x35   :  { %863 = vsyncadd [#allocation4], 4294965248 }
  0x36   :  { %864 = dma.done.wait [#allocation7], 512  }
  0x37   :  { %865 = vsyncadd [#allocation7], 4294966784  ;;  %v875_v0 = vmov 0   ;;  %v876_v1 = vmov 0.0|0.0   ;;  %v75_v2 = vld [vmem:[%s1107_s0] sm:$0xff]  ;;  %v85_v4 = vld [vmem:[%s1108_s1 + $0x8] sm:$0xff]  ;;  %v76_v14 = vlaneseq }
  0x38   :  { %713 = vset.pattern.permute.xlu0 %v875_v0  ;;  %665 = vmatprep.subr.bf16.mxu0 %v876_v1  ;;  %v84_v3 = vld [vmem:[%s1108_s1] sm:$0xff]  ;;  %vm877_vm0 = vmmov 0   ;;  %v878_v6 = vmov 0.0   ;;  %v162_v7 = vld [vmem:[#allocation6] sm:$0xff]  ;;  %v171_v9 = vld [vmem:[#allocation3 + $0x8] sm:$0xff]  ;;  %s879_s0 = smov 32  }
  0x39   :  { %668 = vmatprep.subr.bf16.mxu1 %v876_v1  ;;  %79 = vperm.xlu0 %713, %v75_v2   ;;  %v666_v5 = vpack.c.bf16 %v85_v4, %v84_v3  ;;  %v170_v8 = vld [vmem:[#allocation3] sm:$0xff]  ;;  %v172_v11 = vld [vmem:[#allocation3 + $0x10] sm:$0xff]  ;;  %v173_v12 = vld [vmem:[#allocation3 + $0x18] sm:$0xff]  ;;  %v77_v15 = vand.u32 127, %v76_v14  ;;  %vm86_vm1 = vcmask 130048   ;;  %vm160_vm3 = vcmask 261120  }
  0x3a   :  { %613 = vmatprep.mubr.msk.f32.mxu0 %vm877_vm0, %v878_v6  ;;  %632 = vmatprep.mubr.msk.f32.mxu1 %vm877_vm0, %v878_v6  ;;  %v669_v10 = vpack.c.bf16 %v171_v9, %v170_v8  ;;  %v672_v13 = vpack.c.bf16 %v173_v12, %v172_v11  ;;  %v174_v18 = vld [vmem:[#allocation3 + $0x20] sm:$0xff]  ;;  %v175_v19 = vld [vmem:[#allocation3 + $0x28] sm:$0xff]  ;;  %v176_v21 = vld [vmem:[#allocation3 + $0x30] sm:$0xff]  ;;  %vm167_vm4 = vcmask 523520   ;;  %vm185_vm5 = vcmask 523264   ;;  %s880_s4 = smov 64  }
  0x3b   :  { %667 = vmatpush3.bf16.msra.mxu0 %v666_v5  ;;  %v675_v20 = vpack.c.bf16 %v175_v19, %v174_v18  ;;  %v177_v22 = vld [vmem:[#allocation3 + $0x38] sm:$0xff]  ;;  %v266_v33 = vld [vmem:[#allocation8] sm:$0xff]  ;;  %v308_v44 = vld [vmem:[#allocation3 + $0x40] sm:$0xff]  ;;  %s881_s29 = smov 96  }
  0x3c   :  { %680 = vmatprep.subr.bf16.mxu0 %v876_v1  ;;  %670 = vmatpush3.bf16.msra.mxu1 %v669_v10  ;;  %v678_v23 = vpack.c.bf16 %v177_v22, %v176_v21  ;;  %v574_v28 = vld [vmem:[%s1110_s3] ss:$0 sm:$0xff]  ;;  %v309_v45 = vld [vmem:[#allocation3 + $0x48] sm:$0xff]  ;;  %v310_v47 = vld [vmem:[#allocation3 + $0x50] sm:$0xff] }
  0x3d   :  { %164 = vrot.lane.b32.xlu0 %v162_v7, %s879_s0  ;;  %671 = vmatprep.subr.bf16.mxu1 %v876_v1  ;;  %v681_v46 = vpack.c.bf16 %v309_v45, %v308_v44  ;;  %v311_v48 = vld [vmem:[#allocation3 + $0x58] sm:$0xff]  ;;  %v300_v51 = vld [vmem:[#allocation6 + $0x8] sm:$0xff]  ;;  %v312_v52 = vld [vmem:[#allocation3 + $0x60] sm:$0xff] }
  0x3e   :  { %v684_v49 = vpack.c.bf16 %v311_v48, %v310_v47  ;;  %v313_v53 = vld [vmem:[#allocation3 + $0x68] sm:$0xff]  ;;  %v314_v55 = vld [vmem:[#allocation3 + $0x70] sm:$0xff]  ;;  %v315_v56 = vld [vmem:[#allocation3 + $0x78] sm:$0xff] }
  0x3f   :  { %v687_v54 = vpack.c.bf16 %v313_v53, %v312_v52  ;;  %v690_v57 = vpack.c.bf16 %v315_v56, %v314_v55  ;;  %v405_v58 = vld [vmem:[#allocation8 + $0x8] sm:$0xff]  ;;  %v442_v18 = vld [vmem:[%s1113_s6 + $0x10] sm:$0xff] }
  0x40   :  { %673 = vmatpush3.bf16.msra.mxu1 %v672_v13  ;;  %v578_v0 = vld [vmem:[%s1110_s3 + $0x1] ss:$0 sm:$0xff] }
  0x41   :  { %674 = vmatprep.subr.bf16.mxu1 %v876_v1 }
  0x44   :  { %676 = vmatpush3.bf16.msra.mxu1 %v675_v20  ;;  %v443_v20 = vld [vmem:[%s1113_s6 + $0x18] sm:$0xff] }
  0x45   :  { %677 = vmatprep.subr.bf16.mxu1 %v876_v1  ;;  %v696_v21 = vpack.c.bf16 %v443_v20, %v442_v18 }
  0x48   :  { %679 = vmatpush3.bf16.msra.mxu1 %v678_v23 }
  0x49   :  { %692 = vmatprep.subr.bf16.mxu1 %v876_v1 }
  0xb8   :  { %v80_v16 = vpop.permute.xlu0 %79 }
  0xb9   :  { %vm81_vm2 = vcmp.eq.s32.totalorder %v80_v16, %v77_v15  ;;  %v440_v16 = vld [vmem:[%s1113_s6] sm:$0xff] }
  0xba   :  { %v572_v17 = vsel %vm81_vm2, 1.0, %v878_v6 }
  0xbb   :  { %614 = vmatmul.mubr.msk.f32.vlgmr.msra.gmra.mrb[0].mxu0 %vm86_vm1, %v572_v17  ;;  %v441_v17 = vld [vmem:[%s1113_s6 + $0x8] sm:$0xff]  ;;  %s882_s6 = smov [#allocation10]  }
  0xbc   :  { %651 = vmatprep.mubr.msk.f32.mxu0 %vm877_vm0, %v878_v6  ;;  %v165_v24 = vpop.permute.xlu0 %164  ;;  %682 = vmatpush3.bf16.msra.mxu0 %v681_v46  ;;  %v693_v19 = vpack.c.bf16 %v441_v17, %v440_v16  ;;  %s540_s30 = sshll.u32 %s882_s6, 4  ;;  %s541_s30 = int_to_ptr.vmem [resolvable:$true] %s540_s30 }
  0xbd   :  { %683 = vmatprep.subr.bf16.mxu0 %v876_v1  ;;  %s796_s2 = scalar_lea.vmem %s541_s30, 256  ;;  %p801_p11 = scmp.lt.s32.totalorder %s541_s30, %s541_s30 }
  0xbe   :  { %p797_p10 = scmp.ne.s32.totalorder %s541_s30, %s796_s2  ;;  %p802_p12 = scmp.lt.s32.totalorder %s796_s2, %s796_s2 }
  0xc0   :  { %685 = vmatpush3.bf16.msra.mxu0 %v684_v49  ;;  %p803_p13 = por %p802_p12, %p801_p11 }
  0xc1   :  { %686 = vmatprep.subr.bf16.mxu0 %v876_v1 }
  0xc2   :  { %p804_p0 = pnand %p803_p13, %p797_p10 }
  0xc4   :  { %688 = vmatpush3.bf16.msra.mxu0 %v687_v54 }
  0xc5   :  { %689 = vmatprep.subr.bf16.mxu0 %v876_v1 }
  0xc8   :  { %691 = vmatpush3.bf16.msra.mxu0 %v690_v57 }
 0x18e   :  { %v156_v25 = vpop.f32.mrb[0].mxu0 }
 0x18f   :  { %161 = vst.msk [vmem:[#allocation2] sm:$0xff] %vm160_vm3, %v156_v25  ;;  %v615_v26 = vpop.f32.mrb[1].mxu0 }
 0x190   :  { %168 = vst.msk [vmem:[#allocation2] sm:$0xff] %vm167_vm4, %v165_v24 }
 0x197   :  { %v169_v27 = vld [vmem:[#allocation2] sm:$0xff] }
 0x198   :  { %633 = vmatmul.mubr.msk.f32.vlgmr.msra.gmra.mrb[0].mxu1 %vm185_vm5, %v169_v27 }
 0x199   :  { %662 = vmatprep.mubr.msk.f32.mxu1 %vm877_vm0, %v878_v6  ;;  %694 = vmatpush3.bf16.msra.mxu1 %v693_v19 }
 0x19a   :  { %695 = vmatprep.subr.bf16.mxu1 %v876_v1 }
 0x19d   :  { %697 = vmatpush3.bf16.msra.mxu1 %v696_v21 }
 0x26b   :  { %v255_v29 = vpop.f32.mrb[0].mxu1 }
 0x26c   :  { %v256_v30 = vadd.f32 %v574_v28, %v255_v29  ;;  %v634_v31 = vpop.f32.mrb[1].mxu1 }
 0x26e   :  { %714 = vtanh.f32 %v256_v30  ;;  %v576_v34 = vmul.f32 -1.442695, %v256_v30 }
 0x270   :  { %716 = vpow2.f32 %v576_v34 }
 0x278   :  { %v715_v32 = vpop.eup %714 }
 0x279   :  { %273 = vrot.lane.b32.xlu1 %v715_v32, %s880_s4 }
 0x27a   :  { %v717_v35 = vpop.eup %716 }
 0x27b   :  { %v262_v36 = vadd.f32 1.0, %v717_v35 }
 0x27d   :  { %268 = vrot.lane.b32.xlu1 %v266_v33, %s879_s0  ;;  %718 = vrcp.f32 %v262_v36 }
 0x287   :  { %v719_v37 = vpop.eup %718 }
 0x2eb   :  { %v274_v38 = vpop.permute.xlu1 %273 }
 0x2ec   :  { %v276_v39 = vmul.f32 %v719_v37, %v274_v38 }
 0x2ee   :  { %278 = vrot.lane.b32.xlu0 %v276_v39, %s879_s0 }
 0x2ef   :  { %v269_v40 = vpop.permute.xlu1 %268 }
 0x2f0   :  { %v271_v41 = vmul.f32 %v719_v37, %v269_v40 }
 0x360   :  { %v279_v42 = vpop.permute.xlu0 %278 }
 0x361   :  { %v1022_v43 = vadd.f32 %v279_v42, %v271_v41 }
 0x363   :  { %720 = vtanh.f32 %v1022_v43 }
 0x36d   :  { %v721_v50 = vpop.eup %720 }
 0x36e   :  { %284 = vrot.lane.b32.xlu1 %v721_v50, %s880_s4 }
 0x372   :  { %302 = vrot.lane.b32.xlu1 %v300_v51, %s879_s0 }
 0x376   :  { %407 = vrot.lane.b32.xlu1 %v405_v58, %s879_s0 }
 0x3e0   :  { %v285_v59 = vpop.permute.xlu1 %284 }
 0x3e1   :  { %v287_v60 = vmul.f32 %v719_v37, %v285_v59 }
 0x3e3   :  { %289 = vrot.lane.b32.xlu0 %v287_v60, %s879_s0 }
 0x3e4   :  { %v303_v61 = vpop.permute.xlu1 %302 }
 0x3e8   :  { %v408_v12 = vpop.permute.xlu1 %407 }
 0x455   :  { %v290_v62 = vpop.permute.xlu0 %289 }
 0x456   :  { %292 = vst.msk [vmem:[#allocation10] sm:$0xff] %vm160_vm3, %v290_v62  ;;  %298 = vst.msk [vmem:[#allocation2] sm:$0xff] %vm160_vm3, %v290_v62 }
 0x457   :  { %305 = vst.msk [vmem:[#allocation2] sm:$0xff] %vm167_vm4, %v303_v61 }
 0x45e   :  { %v306_v63 = vld [vmem:[#allocation2] sm:$0xff] }
 0x45f   :  { %652 = vmatmul.mubr.msk.f32.vlgmr.msra.gmra.mrb[2].mxu0 %vm185_vm5, %v306_v63 }
 0x532   :  { %v393_v2 = vpop.f32.mrb[2].mxu0 }
 0x533   :  { %v394_v3 = vadd.f32 %v578_v0, %v393_v2  ;;  %v653_v4 = vpop.f32.mrb[3].mxu0 }
 0x535   :  { %722 = vtanh.f32 %v394_v3  ;;  %v580_v6 = vmul.f32 -1.442695, %v394_v3 }
 0x537   :  { %724 = vpow2.f32 %v580_v6 }
 0x53f   :  { %v723_v5 = vpop.eup %722 }
 0x540   :  { %412 = vrot.lane.b32.xlu0 %v723_v5, %s880_s4 }
 0x541   :  { %v725_v7 = vpop.eup %724 }
 0x542   :  { %v400_v8 = vadd.f32 1.0, %v725_v7 }
 0x544   :  { %726 = vrcp.f32 %v400_v8 }
 0x54e   :  { %v727_v9 = vpop.eup %726 }
 0x54f   :  { %v410_v13 = vmul.f32 %v727_v9, %v408_v12 }
 0x5b2   :  { %v413_v10 = vpop.permute.xlu0 %412 }
 0x5b3   :  { %v415_v11 = vmul.f32 %v727_v9, %v413_v10 }
 0x5b5   :  { %417 = vrot.lane.b32.xlu0 %v415_v11, %s879_s0 }
 0x627   :  { %v418_v14 = vpop.permute.xlu0 %417 }
 0x628   :  { %v420_v15 = vadd.f32 %v418_v14, %v410_v13 }
 0x62a   :  { %728 = vtanh.f32 %v420_v15 }
 0x634   :  { %v729_v22 = vpop.eup %728 }
 0x635   :  { %423 = vrot.lane.b32.xlu1 %v729_v22, %s880_s4 }
 0x639   :  { %294 = vrot.lane.b32.xlu1 %v1022_v43, %s881_s29 }
 0x6a7   :  { %v424_v23 = vpop.permute.xlu1 %423 }
 0x6a8   :  { %v426_v24 = vmul.f32 %v727_v9, %v424_v23 }
 0x6aa   :  { %428 = vrot.lane.b32.xlu0 %v426_v24, %s879_s0 }
 0x6ab   :  { %v295_v25 = vpop.permute.xlu1 %294 }
 0x6ac   :  { %297 = vst.msk [vmem:[#allocation12] sm:$0xff] %vm160_vm3, %v295_v25 }
 0x6ae   :  { %434 = vrot.lane.b32.xlu0 %v420_v15, %s881_s29 }
 0x71c   :  { %v429_v26 = vpop.permute.xlu0 %428 }
 0x71d   :  { %439 = vst.msk [vmem:[#allocation2] sm:$0xff] %vm160_vm3, %v429_v26  ;;  %432 = vst.msk [vmem:[#allocation10 + $0x8] sm:$0xff] %vm160_vm3, %v429_v26  ;;  %663 = vmatmul.mubr.msk.f32.vlgmr.msra.gmra.mrb[2].mxu1 %vm160_vm3, %v429_v26 }
 0x720   :  { %v435_v1 = vpop.permute.xlu0 %434 }
 0x721   :  { %438 = vst.msk [vmem:[#allocation12 + $0x8] sm:$0xff] %vm160_vm3, %v435_v1 }
 0x722   :  { %807 = shalt.err (!%p804_p0)
}
 0x723   :  { %s808_s12 = scalar_lea.hbm %s1116_s9, 256 }
 0x724   :  { %p809_p1 = scmp.ne.s32.totalorder %s1116_s9, %s808_s12  ;;  %p812_p2 = scmp.lt.u32.totalorder %s808_s12, %s1116_s9 }
 0x726   :  { %p814_p3 = pnand %p812_p2, %p809_p1 }
 0x728   :  { %817 = shalt.err (!%p814_p3)
}
 0x729   :  { %546 = dma.vmem_to_hbm [thread:$0]  %s541_s30, 256, %s1116_s9, [#allocation11], %s872_s25, %s872_s25, %s873_s26  }
 0x72a   :  { %s883_s18 = smov [#allocation12]  }
 0x72b   :  { %s552_s4 = sshll.u32 %s883_s18, 4  ;;  %s553_s4 = int_to_ptr.vmem [resolvable:$true] %s552_s4 }
 0x72c   :  { %s818_s14 = scalar_lea.vmem %s553_s4, 256  ;;  %p823_p5 = scmp.lt.s32.totalorder %s553_s4, %s553_s4 }
 0x72d   :  { %p819_p4 = scmp.ne.s32.totalorder %s553_s4, %s818_s14  ;;  %p824_p6 = scmp.lt.s32.totalorder %s818_s14, %s818_s14 }
 0x72f   :  { %p825_p7 = por %p824_p6, %p823_p5 }
 0x731   :  { %p826_p8 = pnand %p825_p7, %p819_p4 }
 0x733   :  { %829 = shalt.err (!%p826_p8)
}
 0x734   :  { %s830_s20 = scalar_lea.hbm %s1117_s10, 256 }
 0x735   :  { %p831_p9 = scmp.ne.s32.totalorder %s1117_s10, %s830_s20  ;;  %p834_p10 = scmp.lt.u32.totalorder %s830_s20, %s1117_s10 }
 0x737   :  { %p836_p11 = pnand %p834_p10, %p831_p9 }
 0x739   :  { %839 = shalt.err (!%p836_p11)
}
 0x73a   :  { %558 = dma.vmem_to_hbm [thread:$0]  %s553_s4, 256, %s1117_s10, [#allocation11], %s872_s25, %s872_s25, %s873_s26   ;;  %vm523_vm6 = vcmask 80896  }
 0x73b   :  { %v581_v27 = vld [vmem:[%s1114_s7] ss:$0 sm:$0xff]  ;;  %s884_s6 = smov [#allocation9]  }
 0x73c   :  { %s531_s30 = sshll.u32 %s884_s6, 4  ;;  %s532_s30 = int_to_ptr.vmem [resolvable:$true] %s531_s30 }
 0x73d   :  { %s840_s2 = scalar_lea.vmem %s532_s30, 128  ;;  %p845_p13 = scmp.lt.s32.totalorder %s532_s30, %s532_s30 }
 0x73e   :  { %p841_p12 = scmp.ne.s32.totalorder %s532_s30, %s840_s2  ;;  %p846_p0 = scmp.lt.s32.totalorder %s840_s2, %s840_s2 }
 0x740   :  { %p847_p1 = por %p846_p0, %p845_p13 }
 0x742   :  { %p848_p2 = pnand %p847_p1, %p841_p12 }
 0x7f0   :  { %v519_v28 = vpop.f32.mrb[2].mxu1 }
 0x7f1   :  { %v520_v29 = vadd.f32 %v581_v27, %v519_v28  ;;  %v664_v30 = vpop.f32.mrb[3].mxu1 }
 0x7f3   :  { %524 = vst.msk [vmem:[#allocation9] sm:$0xff] %vm523_vm6, %v520_v29 }
 0x7f4   :  { %851 = shalt.err (!%p848_p2)
}
 0x7f5   :  { %s852_s26 = scalar_lea.hbm %s1115_s8, 128 }
 0x7f6   :  { %p853_p3 = scmp.ne.s32.totalorder %s1115_s8, %s852_s26  ;;  %p856_p4 = scmp.lt.u32.totalorder %s852_s26, %s1115_s8 }
 0x7f8   :  { %p858_p5 = pnand %p856_p4, %p853_p3 }
 0x7fa   :  { %861 = shalt.err (!%p858_p5)
}
 0x7fb   :  { %534 = dma.vmem_to_hbm [thread:$0]  %s532_s30, 128, %s1115_s8, [#allocation5]  }
 0x7fc   :  { %866 = dma.done.wait [#allocation5], 128  }
 0x7fd   :  { %867 = vsyncadd [#allocation5], 4294967168 }
 0x7fe   :  { %868 = dma.done.wait [#allocation11], 512  }
 0x7ff   :  { %869 = vsyncadd [#allocation11], 4294966784 }
 0x800   :  { %568 = vsyncpa [#allocation4], 1 }
 0x801   :  { %569 = vsyncpa [#allocation7], 1 }
 0x802   :  { %570 = vsyncpa [#allocation5], 1 }
 0x803   :  { %571 = vsyncpa [#allocation11], 1 }

</bundles_post_ra>
